<compile_context>
chip_gen: v7x
topology: tpu7x:2x2x1
jax: 0.10.0
libtpu: 0.0.40
codegen_flags: <defaults>
</compile_context>

<pallas_src>
import jax
import jax.numpy as jnp
from jax.experimental import pallas as pl
from jax.experimental.pallas import tpu as pltpu


_LANE = 128
# ~2 MiB per pipeline buffer: 2 input bufs + 2 output bufs = ~8 MiB VMEM,
# safe under the 16 MiB (v5e) / 32 MiB (v6e, v7x) default scoped-VMEM limits.
_TARGET_BLOCK_BYTES = 2 * 1024 * 1024


def _scale_kernel(scale_ref, x_ref, o_ref):
    # Elementwise multiply by a runtime scalar held in SMEM (VPU work only;
    # the kernel is purely HBM-bandwidth bound).
    o_ref[...] = (x_ref[...] * scale_ref[0]).astype(o_ref.dtype)


def _pick_lane_width(n: int):
    """Widest lane-dense last dim (multiple of 128) that divides n exactly."""
    for lanes in (4096, 2048, 1024, 512, 256, 128):
        if n % lanes == 0:
            return lanes
    return None


def _scale_2d(x2d: jax.Array, scale_arr: jax.Array) -> jax.Array:
    rows, lanes = x2d.shape
    dtype_bytes = jnp.dtype(x2d.dtype).itemsize

    # Row tile sized so one block is ~_TARGET_BLOCK_BYTES; multiple of 32 rows
    # keeps sublane packing happy for f32/bf16/int8 alike.
    target_rows = max(32, (_TARGET_BLOCK_BYTES // (lanes * dtype_bytes)) // 32 * 32)
    if rows <= target_rows:
        row_tile = rows          # single block == full array dims (always legal)
        grid = (1,)
    else:
        row_tile = target_rows
        grid = (pl.cdiv(rows, row_tile),)   # last block may be partial; Pallas masks it

    return pl.pallas_call(
        _scale_kernel,
        out_shape=jax.ShapeDtypeStruct((rows, lanes), x2d.dtype),
        grid=grid,
        in_specs=[
            pl.BlockSpec(memory_space=pltpu.MemorySpace.SMEM),      # scale scalar
            pl.BlockSpec((row_tile, lanes), lambda i: (i, 0)),      # data tile
        ],
        out_specs=pl.BlockSpec((row_tile, lanes), lambda i: (i, 0)),
        compiler_params=pltpu.CompilerParams(
            dimension_semantics=("parallel",)),
    )(scale_arr, x2d)


def uniform_box_warp(coords: jax.Array, sidelength: float) -> jax.Array:
    """Pallas implementation of UniformBoxWarp.forward."""
    orig_shape = coords.shape
    scale_arr = jnp.asarray([2.0 / sidelength], dtype=jnp.float32)

    flat = coords.reshape(-1)
    n = flat.shape[0]
    if n == 0:
        return coords

    lanes = _pick_lane_width(n)
    if lanes is not None:
        # Fast path: no pad, no slice — reshape is a pure metadata bitcast.
        x2d = flat.reshape(n // lanes, lanes)
        out2d = _scale_2d(x2d, scale_arr)
        return out2d.reshape(orig_shape)

    # Rare fallback: element count not a multiple of 128 — pad the tail only up
    # to the next 128 and slice it off afterwards.
    # TODO(synk): replace with an in-kernel masked store on the tail tile to
    # avoid the extra pad/slice HBM passes for non-128-divisible sizes.
    lanes = _LANE
    n_pad = pl.cdiv(n, lanes) * lanes
    flat_p = jnp.pad(flat, (0, n_pad - n))
    out2d = _scale_2d(flat_p.reshape(n_pad // lanes, lanes), scale_arr)
    return out2d.reshape(-1)[:n].reshape(orig_shape)


if __name__ == "__main__":
    key = jax.random.PRNGKey(0)
    # pi-GAN style coords: (batch, num_points, 3)
    B, N = 2, 256
    coords = jax.random.normal(key, (B, N, 3), dtype=jnp.float32)

    sidelength = 0.24  # module hyperparameter (deterministic, in-script)

    out = uniform_box_warp(coords, sidelength)
    out = jax.block_until_ready(out)

    # Reference check against plain JAX (same semantics as the PyTorch module).
    ref = coords * (2.0 / sidelength)
    assert out.shape == coords.shape and out.dtype == coords.dtype
    assert jnp.allclose(out, ref, rtol=1e-6, atol=1e-6)

    print("KERNEL_OK")
</pallas_src>

<mosaic_0001>
module attributes {stable_mosaic.version = 11 : i64} {
  func.func @_scale_kernel(%arg0: i32, %arg1: memref<1xf32, #tpu.memory_space<smem>>, %arg2: memref<3x512xf32, #tpu.memory_space<vmem>>, %arg3: memref<3x512xf32, #tpu.memory_space<vmem>>) attributes {dimension_semantics = [#tpu.dimension_semantics<parallel>], iteration_bounds = array<i64: 1>, scalar_prefetch = 0 : i64, scratch_operands = 0 : i64, tpu.core_type = #tpu.core_type<tc>, window_params = [{transform_indices = @transform_0, window_bounds = array<i64: 1>}, {transform_indices = @transform_1, window_bounds = array<i64: 3, 512>}, {transform_indices = @transform_2, window_bounds = array<i64: 3, 512>}]} {
    %c0 = arith.constant 0 : index
    %c0_0 = arith.constant 0 : index
    %0 = vector.load %arg2[%c0, %c0_0] : memref<3x512xf32, #tpu.memory_space<vmem>>, vector<3x512xf32>
    %c0_1 = arith.constant 0 : index
    %1 = memref.load %arg1[%c0_1] : memref<1xf32, #tpu.memory_space<smem>>
    %2 = vector.broadcast %1 : f32 to vector<3x512xf32>
    %3 = arith.mulf %0, %2 : vector<3x512xf32>
    %c0_2 = arith.constant 0 : index
    %c0_3 = arith.constant 0 : index
    %4 = vector.load %arg3[%c0_2, %c0_3] : memref<3x512xf32, #tpu.memory_space<vmem>>, vector<3x512xf32>
    tpu.vector_store %arg3[%c0_2, %c0_3], %3 {strides = array<i32>} : memref<3x512xf32, #tpu.memory_space<vmem>>, vector<3x512xf32>,
    return
  }
  func.func @transform_0(%arg0: i32) -> i32 {
    %c0_i32 = arith.constant 0 : i32
    %c0_i32_0 = arith.constant 0 : i32
    return %c0_i32 : i32
  }
  func.func @transform_1(%arg0: i32) -> (i32, i32) {
    %c0_i32 = arith.constant 0 : i32
    %c0_i32_0 = arith.constant 0 : i32
    return %arg0, %c0_i32 : i32, i32
  }
  func.func @transform_2(%arg0: i32) -> (i32, i32) {
    %c0_i32 = arith.constant 0 : i32
    %c0_i32_0 = arith.constant 0 : i32
    return %arg0, %c0_i32 : i32, i32
  }
}

</mosaic_0001>

<bundles_post_ra>
// kernel: tpu_custom_call.1
= control target key start
LH: loop header
LB: loop body
LE: loop exit
PB: predicated region body
PF: predicated region fallthrough
CT: control target
= control target key end

     0   :  { %8 = vsyncpa [#allocation4], 0  ;;  %s142_s0 = inlined_call_operand.<no memory space> [shape: f32[1], index: 0, kind: input, shape index: {}]   ;;  %s143_s1 = inlined_call_operand.hbm [shape: f32[3,512], index: 1, kind: input, shape index: {}]   ;;  %s144_s2 = inlined_call_operand.hbm [shape: f32[3,512], index: 2, kind: output, shape index: {}]  }
   0x1   :  { %9 = vsyncpa [#allocation5], 0  ;;  %s98_s9 = smov [#allocation3]   ;;  %s50_s13 = scalar_lea.hbm %s143_s1, 256 }
   0x2   :  { %s18_s10 = sshll.u32 %s98_s9, 4  ;;  %p51_p0 = scmp.ne.s32.totalorder %s143_s1, %s50_s13  ;;  %s19_s10 = int_to_ptr.vmem [resolvable:$true] %s18_s10 }
   0x3   :  { %p54_p1 = scmp.lt.u32.totalorder %s50_s13, %s143_s1 }
   0x5   :  { %p56_p2 = pnand %p54_p1, %p51_p0 }
   0x7   :  { %59 = shalt.err (!%p56_p2)
}
   0x8   :  { %s60_s18 = scalar_lea.vmem %s19_s10, 256  ;;  %p65_p4 = scmp.lt.s32.totalorder %s19_s10, %s19_s10 }
   0x9   :  { %p61_p3 = scmp.ne.s32.totalorder %s19_s10, %s60_s18  ;;  %p66_p5 = scmp.lt.s32.totalorder %s60_s18, %s60_s18 }
   0xb   :  { %p67_p6 = por %p66_p5, %p65_p4 }
   0xd   :  { %p68_p7 = pnand %p67_p6, %p61_p3 }
   0xf   :  { %71 = shalt.err (!%p68_p7)
}
  0x10   :  { %21 = dma.hbm_to_vmem [thread:$0]  %s143_s1, 256, %s19_s10, [#allocation4]  }
  0x11   :  { %94 = dma.done.wait [#allocation4], 256  }
  0x12   :  { %95 = vsyncadd [#allocation4], 4294967040  ;;  %v28_v0 = vstv %s142_s0  ;;  %s99_s23 = smov [#allocation6]   ;;  %v25_v1 = vld [vmem:[#allocation3] sm:$0x77] }
  0x13   :  { %s39_s24 = sshll.u32 %s99_s23, 4  ;;  %v26_v2 = vld [vmem:[#allocation3 + $0x8] sm:$0x77]  ;;  %v29_v3 = vmul.f32 %v28_v0, %v25_v1  ;;  %s40_s24 = int_to_ptr.vmem [resolvable:$true] %s39_s24 }
  0x14   :  { %v30_v4 = vmul.f32 %v28_v0, %v26_v2  ;;  %s72_s25 = scalar_lea.vmem %s40_s24, 256  ;;  %p77_p9 = scmp.lt.s32.totalorder %s40_s24, %s40_s24 }
  0x15   :  { %31 = vst [vmem:[#allocation6] sm:$0x77] %v29_v3  ;;  %p73_p8 = scmp.ne.s32.totalorder %s40_s24, %s72_s25  ;;  %p78_p10 = scmp.lt.s32.totalorder %s72_s25, %s72_s25 }
  0x16   :  { %32 = vst [vmem:[#allocation6 + $0x8] sm:$0x77] %v30_v4 }
  0x17   :  { %p79_p11 = por %p78_p10, %p77_p9 }
  0x19   :  { %p80_p12 = pnand %p79_p11, %p73_p8 }
  0x1b   :  { %83 = shalt.err (!%p80_p12)
}
  0x1c   :  { %s84_s0 = scalar_lea.hbm %s144_s2, 256 }
  0x1d   :  { %p85_p13 = scmp.ne.s32.totalorder %s144_s2, %s84_s0  ;;  %p88_p0 = scmp.lt.u32.totalorder %s84_s0, %s144_s2 }
  0x1f   :  { %p90_p1 = pnand %p88_p0, %p85_p13 }
  0x21   :  { %93 = shalt.err (!%p90_p1)
}
  0x22   :  { %42 = dma.vmem_to_hbm [thread:$0]  %s40_s24, 256, %s144_s2, [#allocation5]  }
  0x23   :  { %96 = dma.done.wait [#allocation5], 256  }
  0x24   :  { %97 = vsyncadd [#allocation5], 4294967040 }
  0x25   :  { %46 = vsyncpa [#allocation4], 1 }
  0x26   :  { %47 = vsyncpa [#allocation5], 1 }

</bundles_post_ra>
